<compile_context>
chip_gen: v7x
topology: tpu7x:2x2x1
jax: 0.10.0
libtpu: 0.0.40
codegen_flags: <defaults>
</compile_context>

<pallas_src>
import functools

import jax
import jax.numpy as jnp
from jax.experimental import pallas as pl
from jax.experimental.pallas import tpu as pltpu


S_PAD = 64      # states (37) zero-padded to 64 lanes (contiguous per-row DMA)
HEAD_PAD = 128  # fused (advantage | value) head width for the MXU matmul
OUT_PAD = 8     # lanes actually written back to HBM (>= actions + 1)


def _round_up(n, m):
    return ((n + m - 1) // m) * m


@functools.lru_cache(maxsize=1)
def _num_tensorcores():
    """Best-effort TensorCores-per-chip query (2 on v7x, 1 on v5e/v6e)."""
    try:
        info = pltpu.get_tpu_info()
        for attr in ("num_cores", "core_count", "num_tensorcores"):
            n = getattr(info, attr, None)
            if n:
                return int(n)
    except Exception:
        pass
    try:
        n = getattr(jax.devices()[0], "num_cores", None)
        if n:
            return int(n)
    except Exception:
        pass
    return 1


def dueling_mlp_kernel(x_ref, w1_ref, b1_ref, w2_ref, b2_ref,
                       wh_ref, bh_ref, out_ref, *, actions):
    """One batch tile of the dueling MLP.

    x_ref        : (TILE_B, S_PAD) bf16, zero-padded features
    w1/w2/wh_ref : bf16 weights (in_features, out_features), resident in VMEM
    b1/b2/bh_ref : f32 biases (1, out_features)
    wh/bh        : fused head; cols [0, actions) = advantage, col `actions`
                   = state value V(s), remaining cols are zero padding
    out_ref      : (TILE_B, OUT_PAD) f32; the wrapper slices [:, :actions]
    """
    x = x_ref[...]

    # Layer 1: Linear + ReLU (dropout = identity in eval mode)
    h1 = jnp.dot(x, w1_ref[...], preferred_element_type=jnp.float32) + b1_ref[...]
    h1 = jnp.maximum(h1, 0.0).astype(jnp.bfloat16)

    # Layer 2: Linear + ReLU
    h2 = jnp.dot(h1, w2_ref[...], preferred_element_type=jnp.float32) + b2_ref[...]
    h2 = jnp.maximum(h2, 0.0).astype(jnp.bfloat16)

    # Fused heads: single matmul producing [advantage | value | zero padding]
    head = jnp.dot(h2, wh_ref[...], preferred_element_type=jnp.float32) + bh_ref[...]

    # Mask the value lane and the zero-padding lanes out of the advantage max.
    col = jax.lax.broadcasted_iota(jnp.int32, head.shape, 1)
    adv_masked = jnp.where(col < actions, head, -jnp.inf)
    adv_max = jnp.max(adv_masked, axis=-1, keepdims=True)

    val = head[:, actions:actions + 1]                     # (TILE_B, 1)

    # Q = V + (A - max_a A); only the first OUT_PAD lanes go back to HBM.
    q = val + (head[:, :OUT_PAD] - adv_max)
    out_ref[...] = q.astype(out_ref.dtype)


def prepare_params(params, actions):
    """Pad, fuse and bf16-cast the parameters once, host-side."""
    w1, b1, w2, b2, wa, ba, wv, bv = params
    states, layer1 = w1.shape
    layer2 = w2.shape[1]
    assert states <= S_PAD and actions + 1 <= OUT_PAD

    # Zero-pad the states dim of w1 (matches zero-padded x columns).
    w1p = jnp.zeros((S_PAD, layer1), jnp.float32).at[:states, :].set(w1)

    # Fuse advantage + value heads into one (layer2, HEAD_PAD) weight / bias.
    wh = jnp.zeros((layer2, HEAD_PAD), jnp.float32)
    wh = wh.at[:, :actions].set(wa).at[:, actions:actions + 1].set(wv)
    bh = jnp.zeros((1, HEAD_PAD), jnp.float32)
    bh = bh.at[:, :actions].set(ba).at[:, actions:actions + 1].set(bv)

    return (w1p.astype(jnp.bfloat16), b1,
            w2.astype(jnp.bfloat16), b2,
            wh.astype(jnp.bfloat16), bh)


@functools.partial(jax.jit, static_argnames=("actions", "max_tile_b"))
def dueling_mlp(x, prepped, actions, max_tile_b=1024):
    w1, b1, w2, b2, wh, bh = prepped
    B, states = x.shape
    layer1 = w1.shape[1]
    layer2 = w2.shape[1]

    n_tc = _num_tensorcores()

    # Batch tiling:
    #   * small B            -> one tile (latency-bound)
    #   * medium B, 2-TC chip-> 2 tiles so "parallel" shards across TCs (v7x)
    #   * large B            -> 1024-row tiles (pipelined, near HBM roofline)
    if B <= max_tile_b:
        if n_tc >= 2 and B >= 32:
            tile_b = _round_up(pl.cdiv(B, 2), 16)   # bf16 sublane packing
            b_pad = 2 * tile_b
        else:
            tile_b = _round_up(B, 16)
            b_pad = tile_b
    else:
        tile_b = max_tile_b
        b_pad = _round_up(B, tile_b)

    # Zero-pad batch rows and feature lanes; cast to bf16 for the MXU.
    xp = jnp.pad(x.astype(jnp.bfloat16),
                 ((0, b_pad - B), (0, S_PAD - states)))

    grid = (b_pad // tile_b,)

    flops = 2 * b_pad * (S_PAD * layer1 + layer1 * layer2 + layer2 * HEAD_PAD)
    bytes_accessed = (
        b_pad * S_PAD * 2                                   # x read (bf16)
        + (w1.size + w2.size + wh.size) * 2                 # weights (bf16)
        + (b1.size + b2.size + bh.size) * 4                 # biases (f32)
        + b_pad * OUT_PAD * 4)                              # output (f32)

    # Weights are grid-invariant; default double-buffering is negligible VMEM
    # here, so pipeline_mode tuning is intentionally skipped.
    out = pl.pallas_call(
        functools.partial(dueling_mlp_kernel, actions=actions),
        out_shape=jax.ShapeDtypeStruct((b_pad, OUT_PAD), jnp.float32),
        grid=grid,
        in_specs=[
            pl.BlockSpec((tile_b, S_PAD), lambda i: (i, 0)),   # x: batch-tiled
            pl.BlockSpec(w1.shape, lambda i: (0, 0)),          # weights resident
            pl.BlockSpec(b1.shape, lambda i: (0, 0)),
            pl.BlockSpec(w2.shape, lambda i: (0, 0)),
            pl.BlockSpec(b2.shape, lambda i: (0, 0)),
            pl.BlockSpec(wh.shape, lambda i: (0, 0)),
            pl.BlockSpec(bh.shape, lambda i: (0, 0)),
        ],
        out_specs=pl.BlockSpec((tile_b, OUT_PAD), lambda i: (i, 0)),
        compiler_params=pltpu.CompilerParams(
            dimension_semantics=("parallel",)),
        cost_estimate=pl.CostEstimate(
            flops=flops, transcendentals=0, bytes_accessed=bytes_accessed),
    )(xp, w1, b1, w2, b2, wh, bh)

    return out[:B, :actions]


def init_linear(key, fan_in, fan_out):
    """Mimic torch.nn.Linear default init: U(-1/sqrt(fan_in), 1/sqrt(fan_in)).
    Weight stored as (fan_in, fan_out); bias as (1, fan_out)."""
    kw, kb = jax.random.split(key)
    bound = 1.0 / jnp.sqrt(jnp.float32(fan_in))
    w = jax.random.uniform(kw, (fan_in, fan_out), jnp.float32, -bound, bound)
    b = jax.random.uniform(kb, (1, fan_out), jnp.float32, -bound, bound)
    return w, b


def reference_forward(x, params):
    """Pure-JAX f32 reference matching the PyTorch forward (eval mode)."""
    (w1, b1, w2, b2, wa, ba, wv, bv) = params
    h1 = jnp.maximum(x @ w1 + b1, 0.0)
    h2 = jnp.maximum(h1 @ w2 + b2, 0.0)
    adv = h2 @ wa + ba
    val = h2 @ wv + bv
    return val + (adv - jnp.max(adv, axis=1, keepdims=True))


if __name__ == "__main__":
    states, actions, layer1, layer2 = 37, 4, 64, 64
    batch = 8

    key = jax.random.PRNGKey(0)
    k_x, k1, k2, k3, k4 = jax.random.split(key, 5)

    w1, b1 = init_linear(k1, states, layer1)
    w2, b2 = init_linear(k2, layer1, layer2)
    wv, bv = init_linear(k3, layer2, 1)
    wa, ba = init_linear(k4, layer2, actions)
    params = (w1, b1, w2, b2, wa, ba, wv, bv)

    prepped = prepare_params(params, actions)

    x = jax.random.normal(k_x, (batch, states), jnp.float32)

    out = dueling_mlp(x, prepped, actions=actions)
    out = jax.block_until_ready(out)

    ref = reference_forward(x, params)
    assert out.shape == (batch, actions), out.shape
    max_err = float(jnp.max(jnp.abs(out - ref)))
    assert jnp.allclose(out, ref, atol=1e-1, rtol=1e-2), f"mismatch: {max_err}"

    # Exercise the medium / large batch tiling paths as well.
    for big_b in (100, 3000):
        xb = jax.random.normal(jax.random.PRNGKey(1), (big_b, states), jnp.float32)
        ob = jax.block_until_ready(dueling_mlp(xb, prepped, actions=actions))
        rb = reference_forward(xb, params)
        assert ob.shape == (big_b, actions)
        assert jnp.allclose(ob, rb, atol=1e-1, rtol=1e-2), \
            f"mismatch at B={big_b}: {float(jnp.max(jnp.abs(ob - rb)))}"

    print("KERNEL_OK")
</pallas_src>

<mosaic_0001>
module attributes {stable_mosaic.version = 11 : i64} {
  func.func @dueling_mlp_kernel(%arg0: i32, %arg1: memref<16x64xbf16, #tpu.memory_space<vmem>>, %arg2: memref<64x64xbf16, #tpu.memory_space<vmem>>, %arg3: memref<1x64xf32, #tpu.memory_space<vmem>>, %arg4: memref<64x64xbf16, #tpu.memory_space<vmem>>, %arg5: memref<1x64xf32, #tpu.memory_space<vmem>>, %arg6: memref<64x128xbf16, #tpu.memory_space<vmem>>, %arg7: memref<1x128xf32, #tpu.memory_space<vmem>>, %arg8: memref<16x8xf32, #tpu.memory_space<vmem>>) attributes {dimension_semantics = [#tpu.dimension_semantics<parallel>], iteration_bounds = array<i64: 1>, scalar_prefetch = 0 : i64, scratch_operands = 0 : i64, tpu.core_type = #tpu.core_type<tc>, window_params = [{transform_indices = @transform_0, window_bounds = array<i64: 16, 64>}, {pipeline_mode = #tpu.pipeline_mode<synchronous>, transform_indices = @transform_1, window_bounds = array<i64: 64, 64>}, {pipeline_mode = #tpu.pipeline_mode<synchronous>, transform_indices = @transform_2, window_bounds = array<i64: 1, 64>}, {pipeline_mode = #tpu.pipeline_mode<synchronous>, transform_indices = @transform_3, window_bounds = array<i64: 64, 64>}, {pipeline_mode = #tpu.pipeline_mode<synchronous>, transform_indices = @transform_4, window_bounds = array<i64: 1, 64>}, {pipeline_mode = #tpu.pipeline_mode<synchronous>, transform_indices = @transform_5, window_bounds = array<i64: 64, 128>}, {pipeline_mode = #tpu.pipeline_mode<synchronous>, transform_indices = @transform_6, window_bounds = array<i64: 1, 128>}, {transform_indices = @transform_7, window_bounds = array<i64: 16, 8>}]} {
    %c0 = arith.constant 0 : index
    %c0_0 = arith.constant 0 : index
    %0 = vector.load %arg1[%c0, %c0_0] : memref<16x64xbf16, #tpu.memory_space<vmem>>, vector<16x64xbf16>
    %c0_1 = arith.constant 0 : index
    %c0_2 = arith.constant 0 : index
    %1 = vector.load %arg2[%c0_1, %c0_2] : memref<64x64xbf16, #tpu.memory_space<vmem>>, vector<64x64xbf16>
    %cst = arith.constant dense<0.000000e+00> : vector<16x64xf32>
    %2 = tpu.matmul %0, %1, %cst {dimension_numbers = #tpu.dot_dimension_numbers<[1], [0], [0], [1], [0, 0, 1, 1], [], []>} : vector<16x64xbf16>, vector<64x64xbf16>, vector<16x64xf32> -> vector<16x64xf32>
    %c0_3 = arith.constant 0 : index
    %c0_4 = arith.constant 0 : index
    %3 = vector.load %arg3[%c0_3, %c0_4] : memref<1x64xf32, #tpu.memory_space<vmem>>, vector<1x64xf32>
    %4 = vector.broadcast %3 : vector<1x64xf32> to vector<16x64xf32>
    %5 = arith.addf %2, %4 : vector<16x64xf32>
    %cst_5 = arith.constant 0.000000e+00 : f32
    %6 = vector.broadcast %cst_5 : f32 to vector<16x64xf32>
    %7 = arith.maximumf %5, %6 : vector<16x64xf32>
    %8 = arith.truncf %7 : vector<16x64xf32> to vector<16x64xbf16>
    %c0_6 = arith.constant 0 : index
    %c0_7 = arith.constant 0 : index
    %9 = vector.load %arg4[%c0_6, %c0_7] : memref<64x64xbf16, #tpu.memory_space<vmem>>, vector<64x64xbf16>
    %cst_8 = arith.constant dense<0.000000e+00> : vector<16x64xf32>
    %10 = tpu.matmul %8, %9, %cst_8 {dimension_numbers = #tpu.dot_dimension_numbers<[1], [0], [0], [1], [0, 0, 1, 1], [], []>} : vector<16x64xbf16>, vector<64x64xbf16>, vector<16x64xf32> -> vector<16x64xf32>
    %c0_9 = arith.constant 0 : index
    %c0_10 = arith.constant 0 : index
    %11 = vector.load %arg5[%c0_9, %c0_10] : memref<1x64xf32, #tpu.memory_space<vmem>>, vector<1x64xf32>
    %12 = vector.broadcast %11 : vector<1x64xf32> to vector<16x64xf32>
    %13 = arith.addf %10, %12 : vector<16x64xf32>
    %cst_11 = arith.constant 0.000000e+00 : f32
    %14 = vector.broadcast %cst_11 : f32 to vector<16x64xf32>
    %15 = arith.maximumf %13, %14 : vector<16x64xf32>
    %16 = arith.truncf %15 : vector<16x64xf32> to vector<16x64xbf16>
    %c0_12 = arith.constant 0 : index
    %c0_13 = arith.constant 0 : index
    %17 = vector.load %arg6[%c0_12, %c0_13] : memref<64x128xbf16, #tpu.memory_space<vmem>>, vector<64x128xbf16>
    %cst_14 = arith.constant dense<0.000000e+00> : vector<16x128xf32>
    %18 = tpu.matmul %16, %17, %cst_14 {dimension_numbers = #tpu.dot_dimension_numbers<[1], [0], [0], [1], [0, 0, 1, 1], [], []>} : vector<16x64xbf16>, vector<64x128xbf16>, vector<16x128xf32> -> vector<16x128xf32>
    %c0_15 = arith.constant 0 : index
    %c0_16 = arith.constant 0 : index
    %19 = vector.load %arg7[%c0_15, %c0_16] : memref<1x128xf32, #tpu.memory_space<vmem>>, vector<1x128xf32>
    %20 = vector.broadcast %19 : vector<1x128xf32> to vector<16x128xf32>
    %21 = arith.addf %18, %20 : vector<16x128xf32>
    %22 = tpu.iota {dimensions = array<i32: 1>} : vector<16x128xi32>
    %c4_i32 = arith.constant 4 : i32
    %23 = vector.broadcast %c4_i32 : i32 to vector<16x128xi32>
    %24 = arith.cmpi slt, %22, %23 : vector<16x128xi32>
    %cst_17 = arith.constant 0xFF800000 : f32
    %25 = vector.broadcast %cst_17 : f32 to vector<16x128xf32>
    %26 = arith.select %24, %21, %25 : vector<16x128xi1>, vector<16x128xf32>
    %cst_18 = arith.constant dense<0xFF800000> : vector<16xf32>
    %27 = vector.multi_reduction <maximumf>, %26, %cst_18 [1] : vector<16x128xf32> to vector<16xf32>
    %28 = vector.shape_cast %27 : vector<16xf32> to vector<16x1xf32>
    %29 = vector.extract_strided_slice %21 {offsets = [0, 4], sizes = [16, 1], strides = [1, 1]} : vector<16x128xf32> to vector<16x1xf32>
    %30 = vector.extract_strided_slice %21 {offsets = [0, 0], sizes = [16, 8], strides = [1, 1]} : vector<16x128xf32> to vector<16x8xf32>
    %31 = vector.broadcast %28 : vector<16x1xf32> to vector<16x8xf32>
    %32 = arith.subf %30, %31 : vector<16x8xf32>
    %33 = vector.broadcast %29 : vector<16x1xf32> to vector<16x8xf32>
    %34 = arith.addf %33, %32 : vector<16x8xf32>
    %c0_19 = arith.constant 0 : index
    %c0_20 = arith.constant 0 : index
    %35 = vector.load %arg8[%c0_19, %c0_20] : memref<16x8xf32, #tpu.memory_space<vmem>>, vector<16x8xf32>
    tpu.vector_store %arg8[%c0_19, %c0_20], %34 {strides = array<i32>} : memref<16x8xf32, #tpu.memory_space<vmem>>, vector<16x8xf32>,
    return
  }
  func.func @transform_0(%arg0: i32) -> (i32, i32) {
    %c0_i32 = arith.constant 0 : i32
    %c0_i32_0 = arith.constant 0 : i32
    return %arg0, %c0_i32 : i32, i32
  }
  func.func @transform_1(%arg0: i32) -> (i32, i32) {
    %c0_i32 = arith.constant 0 : i32
    %c0_i32_0 = arith.constant 0 : i32
    %c0_i32_1 = arith.constant 0 : i32
    return %c0_i32, %c0_i32_0 : i32, i32
  }
  func.func @transform_2(%arg0: i32) -> (i32, i32) {
    %c0_i32 = arith.constant 0 : i32
    %c0_i32_0 = arith.constant 0 : i32
    %c0_i32_1 = arith.constant 0 : i32
    return %c0_i32, %c0_i32_0 : i32, i32
  }
  func.func @transform_3(%arg0: i32) -> (i32, i32) {
    %c0_i32 = arith.constant 0 : i32
    %c0_i32_0 = arith.constant 0 : i32
    %c0_i32_1 = arith.constant 0 : i32
    return %c0_i32, %c0_i32_0 : i32, i32
  }
  func.func @transform_4(%arg0: i32) -> (i32, i32) {
    %c0_i32 = arith.constant 0 : i32
    %c0_i32_0 = arith.constant 0 : i32
    %c0_i32_1 = arith.constant 0 : i32
    return %c0_i32, %c0_i32_0 : i32, i32
  }
  func.func @transform_5(%arg0: i32) -> (i32, i32) {
    %c0_i32 = arith.constant 0 : i32
    %c0_i32_0 = arith.constant 0 : i32
    %c0_i32_1 = arith.constant 0 : i32
    return %c0_i32, %c0_i32_0 : i32, i32
  }
  func.func @transform_6(%arg0: i32) -> (i32, i32) {
    %c0_i32 = arith.constant 0 : i32
    %c0_i32_0 = arith.constant 0 : i32
    %c0_i32_1 = arith.constant 0 : i32
    return %c0_i32, %c0_i32_0 : i32, i32
  }
  func.func @transform_7(%arg0: i32) -> (i32, i32) {
    %c0_i32 = arith.constant 0 : i32
    %c0_i32_0 = arith.constant 0 : i32
    return %arg0, %c0_i32 : i32, i32
  }
}

</mosaic_0001>

<bundles_post_ra>
// kernel: dueling_mlp.1
= control target key start
LH: loop header
LB: loop body
LE: loop exit
PB: predicated region body
PF: predicated region fallthrough
CT: control target
= control target key end

     0   :  { %12 = vsyncpa [#allocation3], 0  ;;  %s597_s0 = inlined_call_operand.vmem [shape: bf16[16,64], index: 0, kind: input, shape index: {}]   ;;  %s598_s1 = inlined_call_operand.hbm [shape: bf16[64,64], index: 1, kind: input, shape index: {}]   ;;  %s599_s2 = inlined_call_operand.vmem [shape: f32[1,64], index: 2, kind: input, shape index: {}]   ;;  %s600_s3 = inlined_call_operand.vmem [shape: bf16[64,64], index: 3, kind: input, shape index: {}]   ;;  %s601_s4 = inlined_call_operand.vmem [shape: f32[1,64], index: 4, kind: input, shape index: {}]   ;;  %s602_s5 = inlined_call_operand.hbm [shape: bf16[64,128], index: 5, kind: input, shape index: {}]   ;;  %s603_s6 = inlined_call_operand.vmem [shape: f32[1,128], index: 6, kind: input, shape index: {}]   ;;  %s604_s7 = inlined_call_operand.vmem [shape: f32[16,8], index: 7, kind: output, shape index: {}]  }
   0x1   :  { %13 = vsyncpa [#allocation5], 0  ;;  %s490_s24 = smov [#allocation2]   ;;  %s442_s28 = scalar_lea.hbm %s598_s1, 512 }
   0x2   :  { %s21_s25 = sshll.u32 %s490_s24, 4  ;;  %p443_p0 = scmp.ne.s32.totalorder %s598_s1, %s442_s28  ;;  %s22_s25 = int_to_ptr.vmem [resolvable:$true] %s21_s25 }
   0x3   :  { %p446_p1 = scmp.lt.u32.totalorder %s442_s28, %s598_s1 }
   0x5   :  { %p448_p2 = pnand %p446_p1, %p443_p0 }
   0x7   :  { %451 = shalt.err (!%p448_p2)
}
   0x8   :  { %s452_s10 = scalar_lea.vmem %s22_s25, 512  ;;  %p457_p4 = scmp.lt.s32.totalorder %s22_s25, %s22_s25 }
   0x9   :  { %p453_p3 = scmp.ne.s32.totalorder %s22_s25, %s452_s10  ;;  %p458_p5 = scmp.lt.s32.totalorder %s452_s10, %s452_s10 }
   0xb   :  { %p459_p6 = por %p458_p5, %p457_p4 }
   0xd   :  { %p460_p7 = pnand %p459_p6, %p453_p3 }
   0xf   :  { %463 = shalt.err (!%p460_p7)
}
  0x10   :  { %s491_s11 = smov 64   ;;  %s492_s12 = smov 4  }
  0x11   :  { %27 = dma.hbm_to_vmem [thread:$0]  %s598_s1, 512, %s22_s25, [#allocation3], %s491_s11, %s491_s11, %s492_s12  }
  0x12   :  { %s493_s15 = smov [#allocation4]   ;;  %s464_s19 = scalar_lea.hbm %s602_s5, 512 }
  0x13   :  { %s39_s16 = sshll.u32 %s493_s15, 4  ;;  %p465_p8 = scmp.ne.s32.totalorder %s602_s5, %s464_s19  ;;  %s40_s16 = int_to_ptr.vmem [resolvable:$true] %s39_s16 }
  0x14   :  { %p468_p9 = scmp.lt.u32.totalorder %s464_s19, %s602_s5 }
  0x16   :  { %p470_p10 = pnand %p468_p9, %p465_p8 }
  0x18   :  { %473 = shalt.err (!%p470_p10)
}
  0x19   :  { %s474_s24 = scalar_lea.vmem %s40_s16, 512  ;;  %p479_p12 = scmp.lt.s32.totalorder %s40_s16, %s40_s16 }
  0x1a   :  { %p475_p11 = scmp.ne.s32.totalorder %s40_s16, %s474_s24  ;;  %p480_p13 = scmp.lt.s32.totalorder %s474_s24, %s474_s24 }
  0x1c   :  { %p481_p0 = por %p480_p13, %p479_p12 }
  0x1e   :  { %p482_p1 = pnand %p481_p0, %p475_p11 }
  0x20   :  { %485 = shalt.err (!%p482_p1)
}
  0x21   :  { %45 = dma.hbm_to_vmem [thread:$0]  %s602_s5, 512, %s40_s16, [#allocation5], %s491_s11, %s491_s11, %s492_s12  }
  0x22   :  { %486 = dma.done.wait [#allocation3], 512  }
  0x23   :  { %487 = vsyncadd [#allocation3], 4294966784 }
  0x24   :  { %488 = dma.done.wait [#allocation5], 512  }
  0x25   :  { %489 = vsyncadd [#allocation5], 4294966784  ;;  %v494_v0 = vmov 0.0   ;;  %vm495_vm0 = vmmov 0   ;;  %v429_v1 = vld [vmem:[#allocation2] sm:$0xff]   ;;  %v430_v2 = vld [vmem:[#allocation2 + $0x8] sm:$0xff]   ;;  %v318_v35 = vlaneseq }
  0x26   :  { %384 = vmatprep.subr.bf16.mxu0 %v494_v0  ;;  %392 = vmatprep.mubr.msk.bf16.mxu0 %vm495_vm0, %v494_v0  ;;  %v434_v3 = vld [vmem:[%s600_s3] sm:$0xff]   ;;  %v431_v4 = vld [vmem:[#allocation2 + $0x10] sm:$0xff]   ;;  %v435_v5 = vld [vmem:[%s600_s3 + $0x8] sm:$0xff]   ;;  %vm101_vm1 = vcmask 523264   ;;  %v496_v34 = vmov 4   ;;  %vm341_vm3 = vcmask 64512  }
  0x27   :  { %396 = vmatprep.subr.bf16.mxu1 %v494_v0  ;;  %404 = vmatprep.mubr.msk.bf16.mxu1 %vm495_vm0, %v494_v0  ;;  %v432_v6 = vld [vmem:[#allocation2 + $0x18] sm:$0xff]   ;;  %v433_v7 = vld [vmem:[%s597_s0] sm:$0xff]   ;;  %v436_v8 = vld [vmem:[%s600_s3 + $0x10] sm:$0xff]   ;;  %v319_v36 = vand.u32 127, %v318_v35 }
  0x28   :  { %385 = vmatpush3.bf16.msra.mxu0 %v429_v1  ;;  %397 = vmatpush3.bf16.msra.mxu1 %v434_v3  ;;  %v437_v9 = vld [vmem:[%s600_s3 + $0x18] sm:$0xff]   ;;  %v438_v10 = vld [vmem:[#allocation4] sm:$0xff]   ;;  %v439_v11 = vld [vmem:[#allocation4 + $0x8] sm:$0xff]  }
  0x29   :  { %386 = vmatprep.subr.bf16.mxu0 %v494_v0  ;;  %398 = vmatprep.subr.bf16.mxu1 %v494_v0  ;;  %v350_v12 = vld [vmem:[%s599_s2] ss:$0 sm:$0xff]  ;;  %v440_v22 = vld [vmem:[#allocation4 + $0x10] sm:$0xff]   ;;  %v441_v23 = vld [vmem:[#allocation4 + $0x18] sm:$0xff]   ;;  %vm320_vm2 = vcmp.lt.s32.totalorder %v319_v36, 4 }
  0x2a   :  { %v357_v24 = vld [vmem:[%s601_s4] ss:$0 sm:$0xff]  ;;  %427 = vset.pattern.permute.xlu1 %v496_v34  ;;  %428 = vset.pattern.permute.xlu0 %v496_v34 }
  0x2b   :  { %v363_v37 = vld [vmem:[%s603_s6] ss:$0 sm:$0xff] }
  0x2c   :  { %387 = vmatpush3.bf16.msra.mxu0 %v430_v2  ;;  %399 = vmatpush3.bf16.msra.mxu1 %v435_v5 }
  0x2d   :  { %388 = vmatprep.subr.bf16.mxu0 %v494_v0  ;;  %400 = vmatprep.subr.bf16.mxu1 %v494_v0 }
  0x30   :  { %389 = vmatpush3.bf16.msra.mxu0 %v431_v4  ;;  %401 = vmatpush3.bf16.msra.mxu1 %v436_v8 }
  0x31   :  { %390 = vmatprep.subr.bf16.mxu0 %v494_v0  ;;  %402 = vmatprep.subr.bf16.mxu1 %v494_v0 }
  0x34   :  { %391 = vmatpush3.bf16.msra.mxu0 %v432_v6  ;;  %403 = vmatpush3.bf16.msra.mxu1 %v437_v9 }
  0x35   :  { %408 = vmatprep.subr.bf16.mxu0 %v494_v0 }
  0x37   :  { %393 = vmatmul.mubr.msk.bf16.vlgmr.msra.gmra.mrb[0].mxu0 %vm101_vm1, %v433_v7 }
  0x38   :  { %416 = vmatprep.mubr.msk.bf16.mxu0 %vm495_vm0, %v494_v0  ;;  %409 = vmatpush3.bf16.msra.mxu0 %v438_v10 }
  0x39   :  { %410 = vmatprep.subr.bf16.mxu0 %v494_v0 }
  0x3c   :  { %411 = vmatpush3.bf16.msra.mxu0 %v439_v11 }
  0x3d   :  { %412 = vmatprep.subr.bf16.mxu0 %v494_v0 }
  0x40   :  { %413 = vmatpush3.bf16.msra.mxu0 %v440_v22 }
  0x41   :  { %414 = vmatprep.subr.bf16.mxu0 %v494_v0 }
  0x44   :  { %415 = vmatpush3.bf16.msra.mxu0 %v441_v23 }
 0x10a   :  { %v139_v13 = vpop.f32.mrb[0].mxu0 }
 0x10b   :  { %v140_v14 = vadd.f32 %v350_v12, %v139_v13  ;;  %v394_v15 = vpop.f32.mrb[1].mxu0 }
 0x10c   :  { %v142_v16 = vpop.f32.mrb[2].mxu0 }
 0x10d   :  { %v143_v17 = vadd.f32 %v350_v12, %v142_v16  ;;  %v395_v18 = vpop.f32.mrb[3].mxu0  ;;  %v146_v19 = vmax.f32 %v140_v14, 0.0 }
 0x10f   :  { %v147_v20 = vmax.f32 %v143_v17, 0.0 }
 0x111   :  { %v148_v21 = vpack.c.bf16 %v147_v20, %v146_v19 }
 0x113   :  { %405 = vmatmul.mubr.msk.bf16.vlgmr.msra.gmra.mrb[0].mxu1 %vm101_vm1, %v148_v21 }
 0x1e6   :  { %v225_v25 = vpop.f32.mrb[0].mxu1 }
 0x1e7   :  { %v226_v26 = vadd.f32 %v357_v24, %v225_v25  ;;  %v406_v27 = vpop.f32.mrb[1].mxu1 }
 0x1e8   :  { %v228_v28 = vpop.f32.mrb[2].mxu1 }
 0x1e9   :  { %v229_v29 = vadd.f32 %v357_v24, %v228_v28  ;;  %v407_v30 = vpop.f32.mrb[3].mxu1  ;;  %v232_v31 = vmax.f32 %v226_v26, 0.0 }
 0x1eb   :  { %v233_v32 = vmax.f32 %v229_v29, 0.0 }
 0x1ed   :  { %v234_v33 = vpack.c.bf16 %v233_v32, %v232_v31 }
 0x1ef   :  { %417 = vmatmul.mubr.msk.bf16.vlgmr.msra.gmra.mrb[4].mxu0 %vm101_vm1, %v234_v33 }
 0x2c2   :  { %v311_v38 = vpop.f32.mrb[4].mxu0 }
 0x2c3   :  { %v312_v39 = vadd.f32 %v363_v37, %v311_v38  ;;  %v418_v40 = vpop.f32.mrb[5].mxu0 }
 0x2c4   :  { %v314_v41 = vpop.f32.mrb[6].mxu0 }
 0x2c5   :  { %v315_v42 = vadd.f32 %v363_v37, %v314_v41  ;;  %331 = vperm.xlu1 %427, %v312_v39   ;;  %v419_v43 = vpop.f32.mrb[7].mxu0  ;;  %v321_v44 = vsel %vm320_vm2, %v312_v39, -inf }
 0x2c6   :  { %323 = vmax.xlane.f32.xlu0 %v321_v44 }
 0x2c7   :  { %v322_v45 = vsel %vm320_vm2, %v315_v42, -inf }
 0x2c9   :  { %336 = vperm.xlu1 %427, %v315_v42  }
 0x2ca   :  { %325 = vmax.xlane.f32.xlu0 %v322_v45 }
 0x344   :  { %v332_v46 = vpop.permute.xlu1 %331 }
 0x348   :  { %v337_v52 = vpop.permute.xlu1 %336 }
 0x353   :  { %v324_v47 = vpop.xlane.xlu0 %323 }
 0x354   :  { %v327_v48 = vsub.f32 %v312_v39, %v324_v47 }
 0x356   :  { %v339_v49 = vadd.f32 %v332_v46, %v327_v48 }
 0x357   :  { %v326_v50 = vpop.xlane.xlu0 %325 }
 0x358   :  { %342 = vst.msk [vmem:[%s604_s7] sm:$0xff] %vm341_vm3, %v339_v49  ;;  %v328_v51 = vsub.f32 %v315_v42, %v326_v50 }
 0x35a   :  { %v340_v53 = vadd.f32 %v337_v52, %v328_v51 }
 0x35c   :  { %343 = vst.msk [vmem:[%s604_s7 + $0x8] sm:$0xff] %vm341_vm3, %v340_v53 }
 0x35d   :  { %348 = vsyncpa [#allocation3], 1 }
 0x35e   :  { %349 = vsyncpa [#allocation5], 1 }

</bundles_post_ra>
